<compile_context>
chip_gen: v5e
topology: v5e:2x2
jax: 0.10.0
libtpu: 0.0.40
codegen_flags: <defaults>
</compile_context>

<pallas_src>
import jax
import jax.numpy as jnp
import numpy as np
from jax.experimental import pallas as pl
from jax.experimental.pallas import tpu as pltpu

# ----------------------------------------------------------------------------
# Model configuration (matches the PyTorch CombinedModel used here)
# ----------------------------------------------------------------------------
N_NODES = 8           # images == graph nodes; packed onto the 8 sublanes
IMG_H = IMG_W = 16
CNN_IN_CH = 1
C1 = 4                # conv1 filters
C2 = 8                # conv2 filters
CNN_OUT_DIM = 16
NUM_SCALAR = 4
GNN_IN = CNN_OUT_DIM + NUM_SCALAR       # 20
GNN_HIDDEN = 32
GNN_OUT = 1

LANES = 128           # all wide intermediates / slab are 128 lanes (full vreg)
H1, W1 = IMG_H // 2, IMG_W // 2          # 8, 8   (after pool1)
H2, W2 = IMG_H // 4, IMG_W // 4          # 4, 4   (after pool2)

# --- row offsets inside the packed weight slab (all multiples of 8) ----------
R_B1  = 0                                   # conv1 band: 3 taps x 16 rows
R_b1  = 48                                  # conv1 bias row
R_B2  = 56                                  # conv2 band: 3 taps x 128 rows
R_b2  = 440                                 # conv2 bias row
R_FC  = 448                                 # fc: 4 h-blocks x 128 rows
R_fcb = 960                                 # fc bias row
R_G1  = 968                                 # gcn1 weight (20 rows, padded to 24)
R_g1b = 992                                 # gcn1 bias row
R_G2  = 1000                                # gcn2 weight (32 rows)
R_g2b = 1032                                # gcn2 bias row
R_OW  = 1040                                # output-linear weight (32 rows)
R_ob  = 1072                                # output-linear bias row
SLAB_ROWS = 1080


# ----------------------------------------------------------------------------
# The single fused kernel
# ----------------------------------------------------------------------------
def _combined_kernel(x_ref, sc_ref, adj_ref, w_ref, o_ref):
    f32 = jnp.float32
    N = N_NODES

    # ---------------- conv1 (3x3, stride 1, pad 1) + ReLU --------------------
    # x_ref: ((H+2)*N, W*CIN) = (144, 16); rows=(h_padded, n), lanes=(w, ci).
    # Each h-tap is one sublane-aligned slice x banded weight matmul; the w
    # shift and w zero-padding live inside the banded matrix.
    kin = IMG_W * CNN_IN_CH
    acc = jnp.dot(x_ref[0:IMG_H * N, :], w_ref[R_B1:R_B1 + kin, :],
                  preferred_element_type=f32)
    for di in (1, 2):
        acc = acc + jnp.dot(
            x_ref[di * N:di * N + IMG_H * N, :],
            w_ref[R_B1 + di * kin:R_B1 + (di + 1) * kin, :],
            preferred_element_type=f32)
    y1 = jnp.maximum(acc + w_ref[R_b1:R_b1 + 1, :], 0.0)       # (128, 128)

    # ---------------- maxpool1 2x2 --------------------------------------------
    # h direction: VPU max of adjacent 8-row (sublane-aligned) blocks.
    ph = jnp.concatenate(
        [jnp.maximum(y1[(2 * k) * N:(2 * k + 1) * N, :],
                     y1[(2 * k + 1) * N:(2 * k + 2) * N, :])
         for k in range(H1)], axis=0)                           # (64, 128)
    # w direction: max with the C1-lane-shifted copy (wide layout); the
    # "keep even w" compaction is baked into conv2's banded weights.
    shifted = jnp.concatenate(
        [ph[:, C1:], jnp.zeros((H1 * N, C1), f32)], axis=1)
    p1 = jnp.maximum(ph, shifted)                               # (64, 128)

    # ---------------- conv2 (3x3, stride 1, pad 1) + ReLU --------------------
    zrow = jnp.zeros((N, LANES), f32)
    p1p = jnp.concatenate([zrow, p1, zrow], axis=0)             # (80, 128)
    acc = jnp.dot(p1p[0:H1 * N, :], w_ref[R_B2:R_B2 + LANES, :],
                  preferred_element_type=f32)
    for di in (1, 2):
        acc = acc + jnp.dot(
            p1p[di * N:di * N + H1 * N, :],
            w_ref[R_B2 + di * LANES:R_B2 + (di + 1) * LANES, :],
            preferred_element_type=f32)
    y2 = jnp.maximum(acc + w_ref[R_b2:R_b2 + 1, :], 0.0)        # (64, 128)

    # ---------------- maxpool2 2x2 --------------------------------------------
    ph = jnp.concatenate(
        [jnp.maximum(y2[(2 * k) * N:(2 * k + 1) * N, :],
                     y2[(2 * k + 1) * N:(2 * k + 2) * N, :])
         for k in range(H2)], axis=0)                           # (32, 128)
    shifted = jnp.concatenate(
        [ph[:, C2:], jnp.zeros((H2 * N, C2), f32)], axis=1)
    p2 = jnp.maximum(ph, shifted)                               # (32, 128)

    # ---------------- flatten + fc + ReLU -------------------------------------
    # The 4 h-blocks are laid side by side along lanes (vreg relabel); the
    # pool2 even-w compaction and the flatten permutation are baked into fc_w.
    feat_in = jnp.concatenate(
        [p2[u * N:(u + 1) * N, :] for u in range(H2)], axis=1)  # (8, 512)
    feat = jnp.maximum(
        jnp.dot(feat_in, w_ref[R_FC:R_FC + H2 * LANES, 0:CNN_OUT_DIM],
                preferred_element_type=f32)
        + w_ref[R_fcb:R_fcb + 1, 0:CNN_OUT_DIM], 0.0)           # (8, 16)

    # ---------------- GCN layer 1 / 2 + output linear -------------------------
    # adj is the pre-normalized D^{-1/2}(A+I)D^{-1/2} (hoisted out of forward).
    adj = adj_ref[...]
    node = jnp.concatenate([feat, sc_ref[...]], axis=1)         # (8, 20)
    pre = jnp.dot(node, w_ref[R_G1:R_G1 + GNN_IN, 0:GNN_HIDDEN],
                  preferred_element_type=f32)
    h1g = jnp.maximum(jnp.dot(adj, pre, preferred_element_type=f32)
                      + w_ref[R_g1b:R_g1b + 1, 0:GNN_HIDDEN], 0.0)
    pre = jnp.dot(h1g, w_ref[R_G2:R_G2 + GNN_HIDDEN, 0:GNN_HIDDEN],
                  preferred_element_type=f32)
    h2g = jnp.maximum(jnp.dot(adj, pre, preferred_element_type=f32)
                      + w_ref[R_g2b:R_g2b + 1, 0:GNN_HIDDEN], 0.0)
    out = (jnp.dot(h2g, w_ref[R_OW:R_OW + GNN_HIDDEN, 0:GNN_OUT],
                   preferred_element_type=f32)
           + w_ref[R_ob:R_ob + 1, 0:GNN_OUT])
    o_ref[...] = out.astype(o_ref.dtype)


def combined_forward(weight_slab, spatial_data, scalar_data, a_norm):
    """spatial_data: (N, 1, H, W) NCHW; scalar_data: (N, 4); a_norm: (N, N)."""
    N = spatial_data.shape[0]
    assert N == N_NODES, "kernel packs the batch onto exactly 8 sublanes"
    # NCHW -> rows (h, n) with n innermost, lanes (w, ci); plus one zero
    # row-block of h padding on each side (conv1's 3 h-taps slice this).
    x2d = jnp.transpose(spatial_data, (2, 0, 3, 1)).reshape(
        IMG_H * N, IMG_W * CNN_IN_CH)
    zpad = jnp.zeros((N, IMG_W * CNN_IN_CH), jnp.float32)
    xp = jnp.concatenate([zpad, x2d, zpad], axis=0)             # (144, 16)

    vmem = pl.BlockSpec(memory_space=pltpu.MemorySpace.VMEM)
    return pl.pallas_call(
        _combined_kernel,
        out_shape=jax.ShapeDtypeStruct((N, GNN_OUT), jnp.float32),
        in_specs=[vmem, vmem, vmem, vmem],
        out_specs=vmem,
    )(xp, scalar_data, a_norm, weight_slab)


# ----------------------------------------------------------------------------
# One-time weight init + packing into the single lane-dense slab
# ----------------------------------------------------------------------------
def init_params(key):
    ks = jax.random.split(key, 6)

    def w(k, shape, fan_in):
        return np.asarray(jax.random.normal(k, shape, jnp.float32)) / np.sqrt(
            float(fan_in))

    # raw weights (conv weights in (kh, kw, cin, cout) layout)
    conv1_w = w(ks[0], (3, 3, CNN_IN_CH, C1), 9 * CNN_IN_CH)
    conv1_b = np.zeros((C1,), np.float32)
    conv2_w = w(ks[1], (3, 3, C1, C2), 9 * C1)
    conv2_b = np.zeros((C2,), np.float32)
    flat = C2 * H2 * W2                                   # 128
    fc_w_raw = w(ks[2], (flat, CNN_OUT_DIM), flat)        # rows ordered (h2,w2,c2)
    fc_b = np.zeros((CNN_OUT_DIM,), np.float32)
    g1w = w(ks[3], (GNN_IN, GNN_HIDDEN), GNN_IN)
    g1b = np.zeros((GNN_HIDDEN,), np.float32)
    g2w = w(ks[4], (GNN_HIDDEN, GNN_HIDDEN), GNN_HIDDEN)
    g2b = np.zeros((GNN_HIDDEN,), np.float32)
    ow = w(ks[5], (GNN_HIDDEN, GNN_OUT), GNN_HIDDEN)
    ob = np.zeros((GNN_OUT,), np.float32)

    slab = np.zeros((SLAB_ROWS, LANES), np.float32)

    # conv1 banded taps: row = w_in*CIN + ci, col = w_out*C1 + co,
    # nonzero only for dj = w_in - w_out + 1 in [0, 2] (w padding implicit).
    kin = IMG_W * CNN_IN_CH
    for di in range(3):
        for w_out in range(IMG_W):
            for dj in range(3):
                w_in = w_out + dj - 1
                if 0 <= w_in < IMG_W:
                    r0 = R_B1 + di * kin + w_in * CNN_IN_CH
                    slab[r0:r0 + CNN_IN_CH,
                         w_out * C1:(w_out + 1) * C1] = conv1_w[di, dj]
    slab[R_b1, :IMG_W * C1] = np.tile(conv1_b, IMG_W)

    # conv2 banded taps: input rows live in pool1's *wide* lane layout, i.e.
    # only even-w positions (2*w_in)*C1 + c1 — this bakes in the compaction.
    for di in range(3):
        for w_out in range(W1):
            for dj in range(3):
                w_in = w_out + dj - 1
                if 0 <= w_in < W1:
                    r0 = R_B2 + di * LANES + (2 * w_in) * C1
                    slab[r0:r0 + C1,
                         w_out * C2:(w_out + 1) * C2] = conv2_w[di, dj]
    slab[R_b2, :W1 * C2] = np.tile(conv2_b, W1)

    # fc: expanded row = u*128 + (2*w2)*C2 + c2 (pool2 wide layout, h-block u
    # placed at lane offset u*128 by the kernel's flatten concat).
    for u in range(H2):
        for w2 in range(W2):
            r_dst = R_FC + u * LANES + (2 * w2) * C2
            r_src = (u * W2 + w2) * C2
            slab[r_dst:r_dst + C2, :CNN_OUT_DIM] = fc_w_raw[r_src:r_src + C2, :]
    slab[R_fcb, :CNN_OUT_DIM] = fc_b

    # GNN weights / biases (gcn1's cnn-feature and scalar parts merged).
    slab[R_G1:R_G1 + GNN_IN, :GNN_HIDDEN] = g1w
    slab[R_g1b, :GNN_HIDDEN] = g1b
    slab[R_G2:R_G2 + GNN_HIDDEN, :GNN_HIDDEN] = g2w
    slab[R_g2b, :GNN_HIDDEN] = g2b
    slab[R_OW:R_OW + GNN_HIDDEN, :GNN_OUT] = ow
    slab[R_ob, :GNN_OUT] = ob

    return jnp.asarray(slab)


def gcn_norm_adj(edge_index, num_nodes):
    """Symmetric GCN normalization D^{-1/2}(A+I)D^{-1/2}; A[dst, src]=1 per edge.
    Graph-only preprocessing -> computed ONCE per graph, outside the forward."""
    src, dst = edge_index[0], edge_index[1]
    A = jnp.zeros((num_nodes, num_nodes), jnp.float32)
    A = A.at[dst, src].add(1.0)
    A = A + jnp.eye(num_nodes, dtype=jnp.float32)
    deg = A.sum(axis=1)
    dinv = jnp.where(deg > 0, 1.0 / jnp.sqrt(deg), 0.0)
    return dinv[:, None] * A * dinv[None, :]


# ----------------------------------------------------------------------------

if __name__ == "__main__":
    key = jax.random.PRNGKey(0)
    k_spatial, k_scalar, k_params = jax.random.split(key, 3)

    spatial_data = jax.random.normal(
        k_spatial, (N_NODES, CNN_IN_CH, IMG_H, IMG_W), jnp.float32)
    scalar_data = jax.random.normal(k_scalar, (N_NODES, NUM_SCALAR), jnp.float32)

    # simple ring graph with a few chords (PyG convention: row0 = src, row1 = dst)
    src = jnp.array([0, 1, 2, 3, 4, 5, 6, 7, 0, 2, 4, 6], dtype=jnp.int32)
    dst = jnp.array([1, 2, 3, 4, 5, 6, 7, 0, 2, 4, 6, 0], dtype=jnp.int32)
    edge_index = jnp.stack([src, dst], axis=0)

    weight_slab = init_params(k_params)
    a_norm = gcn_norm_adj(edge_index, N_NODES)   # hoisted out of the forward

    fwd = jax.jit(combined_forward)
    out = jax.block_until_ready(fwd(weight_slab, spatial_data, scalar_data, a_norm))
    assert out.shape == (N_NODES, GNN_OUT)
    print("KERNEL_OK")
</pallas_src>

<mosaic_0001>
module attributes {stable_mosaic.version = 11 : i64} {
  func.func @_combined_kernel(%arg0: memref<144x16xf32, #tpu.memory_space<vmem>>, %arg1: memref<8x4xf32, #tpu.memory_space<vmem>>, %arg2: memref<8x8xf32, #tpu.memory_space<vmem>>, %arg3: memref<1080x128xf32, #tpu.memory_space<vmem>>, %arg4: memref<8x1xf32, #tpu.memory_space<vmem>>) attributes {dimension_semantics = [], scalar_prefetch = 0 : i64, scratch_operands = 0 : i64, tpu.core_type = #tpu.core_type<tc>} {
    %c0 = arith.constant 0 : index
    %c0_0 = arith.constant 0 : index
    %0 = vector.load %arg0[%c0, %c0_0] : memref<144x16xf32, #tpu.memory_space<vmem>>, vector<128x16xf32>
    %c0_1 = arith.constant 0 : index
    %c0_2 = arith.constant 0 : index
    %1 = vector.load %arg3[%c0_1, %c0_2] : memref<1080x128xf32, #tpu.memory_space<vmem>>, vector<16x128xf32>
    %cst = arith.constant dense<0.000000e+00> : vector<128x128xf32>
    %2 = tpu.matmul %0, %1, %cst {dimension_numbers = #tpu.dot_dimension_numbers<[1], [0], [0], [1], [0, 0, 1, 1], [], []>} : vector<128x16xf32>, vector<16x128xf32>, vector<128x128xf32> -> vector<128x128xf32>
    %c8 = arith.constant 8 : index
    %c0_3 = arith.constant 0 : index
    %3 = vector.load %arg0[%c8, %c0_3] : memref<144x16xf32, #tpu.memory_space<vmem>>, vector<128x16xf32>
    %c16 = arith.constant 16 : index
    %c0_4 = arith.constant 0 : index
    %4 = vector.load %arg3[%c16, %c0_4] : memref<1080x128xf32, #tpu.memory_space<vmem>>, vector<16x128xf32>
    %cst_5 = arith.constant dense<0.000000e+00> : vector<128x128xf32>
    %5 = tpu.matmul %3, %4, %cst_5 {dimension_numbers = #tpu.dot_dimension_numbers<[1], [0], [0], [1], [0, 0, 1, 1], [], []>} : vector<128x16xf32>, vector<16x128xf32>, vector<128x128xf32> -> vector<128x128xf32>
    %6 = arith.addf %2, %5 : vector<128x128xf32>
    %c16_6 = arith.constant 16 : index
    %c0_7 = arith.constant 0 : index
    %7 = vector.load %arg0[%c16_6, %c0_7] : memref<144x16xf32, #tpu.memory_space<vmem>>, vector<128x16xf32>
    %c32 = arith.constant 32 : index
    %c0_8 = arith.constant 0 : index
    %8 = vector.load %arg3[%c32, %c0_8] : memref<1080x128xf32, #tpu.memory_space<vmem>>, vector<16x128xf32>
    %cst_9 = arith.constant dense<0.000000e+00> : vector<128x128xf32>
    %9 = tpu.matmul %7, %8, %cst_9 {dimension_numbers = #tpu.dot_dimension_numbers<[1], [0], [0], [1], [0, 0, 1, 1], [], []>} : vector<128x16xf32>, vector<16x128xf32>, vector<128x128xf32> -> vector<128x128xf32>
    %10 = arith.addf %6, %9 : vector<128x128xf32>
    %c48 = arith.constant 48 : index
    %c0_10 = arith.constant 0 : index
    %11 = vector.load %arg3[%c48, %c0_10] : memref<1080x128xf32, #tpu.memory_space<vmem>>, vector<1x128xf32>
    %12 = vector.broadcast %11 : vector<1x128xf32> to vector<128x128xf32>
    %13 = arith.addf %10, %12 : vector<128x128xf32>
    %cst_11 = arith.constant 0.000000e+00 : f32
    %14 = vector.broadcast %cst_11 : f32 to vector<128x128xf32>
    %15 = arith.maximumf %13, %14 : vector<128x128xf32>
    %16 = vector.extract_strided_slice %15 {offsets = [0, 0], sizes = [8, 128], strides = [1, 1]} : vector<128x128xf32> to vector<8x128xf32>
    %17 = vector.extract_strided_slice %15 {offsets = [8, 0], sizes = [8, 128], strides = [1, 1]} : vector<128x128xf32> to vector<8x128xf32>
    %18 = arith.maximumf %16, %17 : vector<8x128xf32>
    %19 = vector.extract_strided_slice %15 {offsets = [16, 0], sizes = [8, 128], strides = [1, 1]} : vector<128x128xf32> to vector<8x128xf32>
    %20 = vector.extract_strided_slice %15 {offsets = [24, 0], sizes = [8, 128], strides = [1, 1]} : vector<128x128xf32> to vector<8x128xf32>
    %21 = arith.maximumf %19, %20 : vector<8x128xf32>
    %22 = vector.extract_strided_slice %15 {offsets = [32, 0], sizes = [8, 128], strides = [1, 1]} : vector<128x128xf32> to vector<8x128xf32>
    %23 = vector.extract_strided_slice %15 {offsets = [40, 0], sizes = [8, 128], strides = [1, 1]} : vector<128x128xf32> to vector<8x128xf32>
    %24 = arith.maximumf %22, %23 : vector<8x128xf32>
    %25 = vector.extract_strided_slice %15 {offsets = [48, 0], sizes = [8, 128], strides = [1, 1]} : vector<128x128xf32> to vector<8x128xf32>
    %26 = vector.extract_strided_slice %15 {offsets = [56, 0], sizes = [8, 128], strides = [1, 1]} : vector<128x128xf32> to vector<8x128xf32>
    %27 = arith.maximumf %25, %26 : vector<8x128xf32>
    %28 = vector.extract_strided_slice %15 {offsets = [64, 0], sizes = [8, 128], strides = [1, 1]} : vector<128x128xf32> to vector<8x128xf32>
    %29 = vector.extract_strided_slice %15 {offsets = [72, 0], sizes = [8, 128], strides = [1, 1]} : vector<128x128xf32> to vector<8x128xf32>
    %30 = arith.maximumf %28, %29 : vector<8x128xf32>
    %31 = vector.extract_strided_slice %15 {offsets = [80, 0], sizes = [8, 128], strides = [1, 1]} : vector<128x128xf32> to vector<8x128xf32>
    %32 = vector.extract_strided_slice %15 {offsets = [88, 0], sizes = [8, 128], strides = [1, 1]} : vector<128x128xf32> to vector<8x128xf32>
    %33 = arith.maximumf %31, %32 : vector<8x128xf32>
    %34 = vector.extract_strided_slice %15 {offsets = [96, 0], sizes = [8, 128], strides = [1, 1]} : vector<128x128xf32> to vector<8x128xf32>
    %35 = vector.extract_strided_slice %15 {offsets = [104, 0], sizes = [8, 128], strides = [1, 1]} : vector<128x128xf32> to vector<8x128xf32>
    %36 = arith.maximumf %34, %35 : vector<8x128xf32>
    %37 = vector.extract_strided_slice %15 {offsets = [112, 0], sizes = [8, 128], strides = [1, 1]} : vector<128x128xf32> to vector<8x128xf32>
    %38 = vector.extract_strided_slice %15 {offsets = [120, 0], sizes = [8, 128], strides = [1, 1]} : vector<128x128xf32> to vector<8x128xf32>
    %39 = arith.maximumf %37, %38 : vector<8x128xf32>
    %40 = tpu.concatenate %18, %21, %24, %27, %30, %33, %36, %39 in 0 : vector<8x128xf32>, vector<8x128xf32>, vector<8x128xf32>, vector<8x128xf32>, vector<8x128xf32>, vector<8x128xf32>, vector<8x128xf32>, vector<8x128xf32> -> vector<64x128xf32>
    %41 = vector.extract_strided_slice %40 {offsets = [0, 4], sizes = [64, 124], strides = [1, 1]} : vector<64x128xf32> to vector<64x124xf32>
    %cst_12 = arith.constant 0.000000e+00 : f32
    %42 = vector.broadcast %cst_12 : f32 to vector<64x4xf32>
    %43 = tpu.concatenate %41, %42 in 1 : vector<64x124xf32>, vector<64x4xf32> -> vector<64x128xf32>
    %44 = arith.maximumf %40, %43 : vector<64x128xf32>
    %cst_13 = arith.constant 0.000000e+00 : f32
    %45 = vector.broadcast %cst_13 : f32 to vector<8x128xf32>
    %46 = tpu.concatenate %45, %44, %45 in 0 : vector<8x128xf32>, vector<64x128xf32>, vector<8x128xf32> -> vector<80x128xf32>
    %47 = vector.extract_strided_slice %46 {offsets = [0, 0], sizes = [64, 128], strides = [1, 1]} : vector<80x128xf32> to vector<64x128xf32>
    %c56 = arith.constant 56 : index
    %c0_14 = arith.constant 0 : index
    %48 = vector.load %arg3[%c56, %c0_14] : memref<1080x128xf32, #tpu.memory_space<vmem>>, vector<128x128xf32>
    %cst_15 = arith.constant dense<0.000000e+00> : vector<64x128xf32>
    %49 = tpu.matmul %47, %48, %cst_15 {dimension_numbers = #tpu.dot_dimension_numbers<[1], [0], [0], [1], [0, 0, 1, 1], [], []>} : vector<64x128xf32>, vector<128x128xf32>, vector<64x128xf32> -> vector<64x128xf32>
    %50 = vector.extract_strided_slice %46 {offsets = [8, 0], sizes = [64, 128], strides = [1, 1]} : vector<80x128xf32> to vector<64x128xf32>
    %c184 = arith.constant 184 : index
    %c0_16 = arith.constant 0 : index
    %51 = vector.load %arg3[%c184, %c0_16] : memref<1080x128xf32, #tpu.memory_space<vmem>>, vector<128x128xf32>
    %cst_17 = arith.constant dense<0.000000e+00> : vector<64x128xf32>
    %52 = tpu.matmul %50, %51, %cst_17 {dimension_numbers = #tpu.dot_dimension_numbers<[1], [0], [0], [1], [0, 0, 1, 1], [], []>} : vector<64x128xf32>, vector<128x128xf32>, vector<64x128xf32> -> vector<64x128xf32>
    %53 = arith.addf %49, %52 : vector<64x128xf32>
    %54 = vector.extract_strided_slice %46 {offsets = [16, 0], sizes = [64, 128], strides = [1, 1]} : vector<80x128xf32> to vector<64x128xf32>
    %c312 = arith.constant 312 : index
    %c0_18 = arith.constant 0 : index
    %55 = vector.load %arg3[%c312, %c0_18] : memref<1080x128xf32, #tpu.memory_space<vmem>>, vector<128x128xf32>
    %cst_19 = arith.constant dense<0.000000e+00> : vector<64x128xf32>
    %56 = tpu.matmul %54, %55, %cst_19 {dimension_numbers = #tpu.dot_dimension_numbers<[1], [0], [0], [1], [0, 0, 1, 1], [], []>} : vector<64x128xf32>, vector<128x128xf32>, vector<64x128xf32> -> vector<64x128xf32>
    %57 = arith.addf %53, %56 : vector<64x128xf32>
    %c440 = arith.constant 440 : index
    %c0_20 = arith.constant 0 : index
    %58 = vector.load %arg3[%c440, %c0_20] : memref<1080x128xf32, #tpu.memory_space<vmem>>, vector<1x128xf32>
    %59 = vector.broadcast %58 : vector<1x128xf32> to vector<64x128xf32>
    %60 = arith.addf %57, %59 : vector<64x128xf32>
    %cst_21 = arith.constant 0.000000e+00 : f32
    %61 = vector.broadcast %cst_21 : f32 to vector<64x128xf32>
    %62 = arith.maximumf %60, %61 : vector<64x128xf32>
    %63 = vector.extract_strided_slice %62 {offsets = [0, 0], sizes = [8, 128], strides = [1, 1]} : vector<64x128xf32> to vector<8x128xf32>
    %64 = vector.extract_strided_slice %62 {offsets = [8, 0], sizes = [8, 128], strides = [1, 1]} : vector<64x128xf32> to vector<8x128xf32>
    %65 = arith.maximumf %63, %64 : vector<8x128xf32>
    %66 = vector.extract_strided_slice %62 {offsets = [16, 0], sizes = [8, 128], strides = [1, 1]} : vector<64x128xf32> to vector<8x128xf32>
    %67 = vector.extract_strided_slice %62 {offsets = [24, 0], sizes = [8, 128], strides = [1, 1]} : vector<64x128xf32> to vector<8x128xf32>
    %68 = arith.maximumf %66, %67 : vector<8x128xf32>
    %69 = vector.extract_strided_slice %62 {offsets = [32, 0], sizes = [8, 128], strides = [1, 1]} : vector<64x128xf32> to vector<8x128xf32>
    %70 = vector.extract_strided_slice %62 {offsets = [40, 0], sizes = [8, 128], strides = [1, 1]} : vector<64x128xf32> to vector<8x128xf32>
    %71 = arith.maximumf %69, %70 : vector<8x128xf32>
    %72 = vector.extract_strided_slice %62 {offsets = [48, 0], sizes = [8, 128], strides = [1, 1]} : vector<64x128xf32> to vector<8x128xf32>
    %73 = vector.extract_strided_slice %62 {offsets = [56, 0], sizes = [8, 128], strides = [1, 1]} : vector<64x128xf32> to vector<8x128xf32>
    %74 = arith.maximumf %72, %73 : vector<8x128xf32>
    %75 = tpu.concatenate %65, %68, %71, %74 in 0 : vector<8x128xf32>, vector<8x128xf32>, vector<8x128xf32>, vector<8x128xf32> -> vector<32x128xf32>
    %76 = vector.extract_strided_slice %75 {offsets = [0, 8], sizes = [32, 120], strides = [1, 1]} : vector<32x128xf32> to vector<32x120xf32>
    %cst_22 = arith.constant 0.000000e+00 : f32
    %77 = vector.broadcast %cst_22 : f32 to vector<32x8xf32>
    %78 = tpu.concatenate %76, %77 in 1 : vector<32x120xf32>, vector<32x8xf32> -> vector<32x128xf32>
    %79 = arith.maximumf %75, %78 : vector<32x128xf32>
    %80 = vector.extract_strided_slice %79 {offsets = [0, 0], sizes = [8, 128], strides = [1, 1]} : vector<32x128xf32> to vector<8x128xf32>
    %81 = vector.extract_strided_slice %79 {offsets = [8, 0], sizes = [8, 128], strides = [1, 1]} : vector<32x128xf32> to vector<8x128xf32>
    %82 = vector.extract_strided_slice %79 {offsets = [16, 0], sizes = [8, 128], strides = [1, 1]} : vector<32x128xf32> to vector<8x128xf32>
    %83 = vector.extract_strided_slice %79 {offsets = [24, 0], sizes = [8, 128], strides = [1, 1]} : vector<32x128xf32> to vector<8x128xf32>
    %84 = tpu.concatenate %80, %81, %82, %83 in 1 : vector<8x128xf32>, vector<8x128xf32>, vector<8x128xf32>, vector<8x128xf32> -> vector<8x512xf32>
    %c448 = arith.constant 448 : index
    %c0_23 = arith.constant 0 : index
    %85 = vector.load %arg3[%c448, %c0_23] : memref<1080x128xf32, #tpu.memory_space<vmem>>, vector<512x16xf32>
    %cst_24 = arith.constant dense<0.000000e+00> : vector<8x16xf32>
    %86 = tpu.matmul %84, %85, %cst_24 {dimension_numbers = #tpu.dot_dimension_numbers<[1], [0], [0], [1], [0, 0, 1, 1], [], []>} : vector<8x512xf32>, vector<512x16xf32>, vector<8x16xf32> -> vector<8x16xf32>
    %c960 = arith.constant 960 : index
    %c0_25 = arith.constant 0 : index
    %87 = vector.load %arg3[%c960, %c0_25] : memref<1080x128xf32, #tpu.memory_space<vmem>>, vector<1x16xf32>
    %88 = vector.broadcast %87 : vector<1x16xf32> to vector<8x16xf32>
    %89 = arith.addf %86, %88 : vector<8x16xf32>
    %cst_26 = arith.constant 0.000000e+00 : f32
    %90 = vector.broadcast %cst_26 : f32 to vector<8x16xf32>
    %91 = arith.maximumf %89, %90 : vector<8x16xf32>
    %c0_27 = arith.constant 0 : index
    %c0_28 = arith.constant 0 : index
    %92 = vector.load %arg2[%c0_27, %c0_28] : memref<8x8xf32, #tpu.memory_space<vmem>>, vector<8x8xf32>
    %c0_29 = arith.constant 0 : index
    %c0_30 = arith.constant 0 : index
    %93 = vector.load %arg1[%c0_29, %c0_30] : memref<8x4xf32, #tpu.memory_space<vmem>>, vector<8x4xf32>
    %94 = tpu.concatenate %91, %93 in 1 : vector<8x16xf32>, vector<8x4xf32> -> vector<8x20xf32>
    %c968 = arith.constant 968 : index
    %c0_31 = arith.constant 0 : index
    %95 = vector.load %arg3[%c968, %c0_31] : memref<1080x128xf32, #tpu.memory_space<vmem>>, vector<20x32xf32>
    %cst_32 = arith.constant dense<0.000000e+00> : vector<8x32xf32>
    %96 = tpu.matmul %94, %95, %cst_32 {dimension_numbers = #tpu.dot_dimension_numbers<[1], [0], [0], [1], [0, 0, 1, 1], [], []>} : vector<8x20xf32>, vector<20x32xf32>, vector<8x32xf32> -> vector<8x32xf32>
    %cst_33 = arith.constant dense<0.000000e+00> : vector<8x32xf32>
    %97 = tpu.matmul %92, %96, %cst_33 {dimension_numbers = #tpu.dot_dimension_numbers<[1], [0], [0], [1], [0, 0, 1, 1], [], []>} : vector<8x8xf32>, vector<8x32xf32>, vector<8x32xf32> -> vector<8x32xf32>
    %c992 = arith.constant 992 : index
    %c0_34 = arith.constant 0 : index
    %98 = vector.load %arg3[%c992, %c0_34] : memref<1080x128xf32, #tpu.memory_space<vmem>>, vector<1x32xf32>
    %99 = vector.broadcast %98 : vector<1x32xf32> to vector<8x32xf32>
    %100 = arith.addf %97, %99 : vector<8x32xf32>
    %cst_35 = arith.constant 0.000000e+00 : f32
    %101 = vector.broadcast %cst_35 : f32 to vector<8x32xf32>
    %102 = arith.maximumf %100, %101 : vector<8x32xf32>
    %c1000 = arith.constant 1000 : index
    %c0_36 = arith.constant 0 : index
    %103 = vector.load %arg3[%c1000, %c0_36] : memref<1080x128xf32, #tpu.memory_space<vmem>>, vector<32x32xf32>
    %cst_37 = arith.constant dense<0.000000e+00> : vector<8x32xf32>
    %104 = tpu.matmul %102, %103, %cst_37 {dimension_numbers = #tpu.dot_dimension_numbers<[1], [0], [0], [1], [0, 0, 1, 1], [], []>} : vector<8x32xf32>, vector<32x32xf32>, vector<8x32xf32> -> vector<8x32xf32>
    %cst_38 = arith.constant dense<0.000000e+00> : vector<8x32xf32>
    %105 = tpu.matmul %92, %104, %cst_38 {dimension_numbers = #tpu.dot_dimension_numbers<[1], [0], [0], [1], [0, 0, 1, 1], [], []>} : vector<8x8xf32>, vector<8x32xf32>, vector<8x32xf32> -> vector<8x32xf32>
    %c1032 = arith.constant 1032 : index
    %c0_39 = arith.constant 0 : index
    %106 = vector.load %arg3[%c1032, %c0_39] : memref<1080x128xf32, #tpu.memory_space<vmem>>, vector<1x32xf32>
    %107 = vector.broadcast %106 : vector<1x32xf32> to vector<8x32xf32>
    %108 = arith.addf %105, %107 : vector<8x32xf32>
    %cst_40 = arith.constant 0.000000e+00 : f32
    %109 = vector.broadcast %cst_40 : f32 to vector<8x32xf32>
    %110 = arith.maximumf %108, %109 : vector<8x32xf32>
    %c1040 = arith.constant 1040 : index
    %c0_41 = arith.constant 0 : index
    %111 = vector.load %arg3[%c1040, %c0_41] : memref<1080x128xf32, #tpu.memory_space<vmem>>, vector<32x1xf32>
    %cst_42 = arith.constant dense<0.000000e+00> : vector<8x1xf32>
    %112 = tpu.matmul %110, %111, %cst_42 {dimension_numbers = #tpu.dot_dimension_numbers<[1], [0], [0], [1], [0, 0, 1, 1], [], []>} : vector<8x32xf32>, vector<32x1xf32>, vector<8x1xf32> -> vector<8x1xf32>
    %c1072 = arith.constant 1072 : index
    %c0_43 = arith.constant 0 : index
    %113 = vector.load %arg3[%c1072, %c0_43] : memref<1080x128xf32, #tpu.memory_space<vmem>>, vector<1x1xf32>
    %114 = vector.broadcast %113 : vector<1x1xf32> to vector<8x1xf32>
    %115 = arith.addf %112, %114 : vector<8x1xf32>
    %c0_44 = arith.constant 0 : index
    %c0_45 = arith.constant 0 : index
    %116 = vector.load %arg4[%c0_44, %c0_45] : memref<8x1xf32, #tpu.memory_space<vmem>>, vector<8x1xf32>
    tpu.vector_store %arg4[%c0_44, %c0_45], %115 {strides = array<i32>} : memref<8x1xf32, #tpu.memory_space<vmem>>, vector<8x1xf32>,
    return
  }
}

</mosaic_0001>

<bundles_post_ra>
// kernel: combined_forward.1
= control target key start
LH: loop header
LB: loop body
LE: loop exit
PB: predicated region body
PF: predicated region fallthrough
CT: control target
= control target key end

     0   :  { %9 = vsyncpa [#allocation3], 0  ;;  %s1101_s18 = smov [#allocation2]   ;;  %s1102_s20 = smov 128   ;;  %s1381_s0 = inlined_call_operand.vmem [shape: f32[144,16], index: 0, kind: input, shape index: {}]   ;;  %s1382_s1 = inlined_call_operand.vmem [shape: f32[8,4], index: 1, kind: input, shape index: {}]   ;;  %s1383_s2 = inlined_call_operand.vmem [shape: f32[8,8], index: 2, kind: input, shape index: {}]   ;;  %s1384_s3 = inlined_call_operand.hbm [shape: f32[1080,128], index: 3, kind: input, shape index: {}]   ;;  %s1385_s4 = inlined_call_operand.vmem [shape: f32[8,1], index: 4, kind: output, shape index: {}]  }
   0x1   :  { %s20_s17 = sshll.u32 %s1384_s3, 4  ;;  %s22_s19 = sshll.u32 %s1101_s18, 4  ;;  %s21_s17 = int_to_ptr.hbm [resolvable:$true] %s20_s17  ;;  %s23_s19 = int_to_ptr.vmem [resolvable:$true] %s22_s19 }
   0x2   :  { %s1103_s21 = smov 8  }
   0x3   :  { %28 = dma.hbm_to_vmem [thread:$0]  %s21_s17, 17280, %s23_s19, [#allocation3], %s1102_s20, %s1102_s20, %s1103_s21  }
   0x4   :  { %1099 = dma.done.wait [#allocation3], 17280  }
   0x5   :  { %1100 = vsyncadd [#allocation3], 4294950016  ;;  %v53_v0 = vld [vmem:[#allocation2 + $0x18] sm:$0xff]  ;;  %v52_v1 = vld [vmem:[#allocation2 + $0x10] sm:$0xff]  ;;  %vm54_vm0 = vcmask 130048   ;;  %vm457_vm1 = vcmask 1014784  }
   0x6   :  { %1053 = vmatpush.msra.mxu1 %v53_v0  ;;  %1054 = vmatpush.msra.mxu2 %v53_v0  ;;  %v1139_v2 = vld [vmem:[%s1381_s0 + $0x78] sm:$0xff]  ;;  %v1144_v3 = vld [vmem:[%s1381_s0 + $0x80] sm:$0xff]  ;;  %v50_v4 = vld [vmem:[#allocation2 + $0x8] sm:$0xff]  ;;  %s1106_s30 = smov 120   ;;  %vm691_vm2 = vcmask 982016   ;;  %s1107_s7 = smov 16  }
   0x7   :  { %v253_v5 = vld [vmem:[#allocation2 + $0x28] sm:$0xff]  ;;  %117 = vmatpush.msra.mxu0 %v53_v0  ;;  %v49_v6 = vld [vmem:[#allocation2] sm:$0xff]  ;;  %v236_v10 = vld [vmem:[%s1381_s0 + $0x10] sm:$0xff]  ;;  %vm861_vm3 = vcmask 1043456   ;;  %vm857_vm4 = vcmask 162816   ;;  %vm887_vm5 = vcmask 64512  }
   0x8   :  { %1055 = vmatpush.msra.mxu1 %v52_v1  ;;  %1056 = vmatpush.msra.mxu2 %v52_v1  ;;  %v252_v7 = vld [vmem:[#allocation2 + $0x20] sm:$0xff]  ;;  %v34_v8 = vld [vmem:[%s1381_s0 + $0x8] sm:$0xff]  ;;  %v237_v11 = vld [vmem:[%s1381_s0 + $0x18] sm:$0xff]  ;;  %vm916_vm6 = vcmask 261120   ;;  %vm992_vm7 = vcmask 7168  }
   0x9   :  { %1013 = vmatmul.msk.f32.vlgmr.msra.gmra.mxu1 %vm54_vm0, %v1139_v2  ;;  %1014 = vmatmul.msk.f32.vlgmr.msra.gmra.mxu2 %vm54_vm0, %v1144_v3  ;;  %v33_v9 = vld [vmem:[%s1381_s0] sm:$0xff]  ;;  %v239_v13 = vld [vmem:[%s1381_s0 + $0x28] sm:$0xff]  ;;  %v240_v14 = vld [vmem:[%s1381_s0 + $0x30] sm:$0xff] }
   0xa   :  { %185 = vmatpush.msrb.mxu1 %v50_v4  ;;  %316 = vmatpush.msrb.mxu2 %v253_v5  ;;  %v238_v12 = vld [vmem:[%s1381_s0 + $0x20] sm:$0xff]  ;;  %v241_v15 = vld [vmem:[%s1381_s0 + $0x38] sm:$0xff]  ;;  %v243_v17 = vld [vmem:[%s1381_s0 + $0x48] sm:$0xff] }
   0xb   :  { %118 = vmatpush.msra.mxu0 %v52_v1  ;;  %v242_v16 = vld [vmem:[%s1381_s0 + $0x40] sm:$0xff]  ;;  %v244_v18 = vld [vmem:[%s1381_s0 + $0x50] sm:$0xff]  ;;  %v245_v19 = vld [vmem:[%s1381_s0 + $0x58] sm:$0xff] }
   0xc   :  { %186 = vmatpush.msrb.mxu1 %v49_v6  ;;  %317 = vmatpush.msrb.mxu2 %v252_v7  ;;  %v246_v20 = vld [vmem:[%s1381_s0 + $0x60] sm:$0xff]  ;;  %v247_v21 = vld [vmem:[%s1381_s0 + $0x68] sm:$0xff]  ;;  %v248_v22 = vld [vmem:[%s1381_s0 + $0x70] sm:$0xff] }
   0xd   :  { %999 = vmatmul.msk.f32.vlgmr.msra.gmra.mxu0 %vm54_vm0, %v34_v8  ;;  %v251_v24 = vld [vmem:[%s1381_s0 + $0x88] sm:$0xff]  ;;  %v1251_v33 = vld [vmem:[#allocation2 + $0x30] ss:$0 sm:$0xff]  ;;  %s1104_s0 = smov 124  }
  0x11   :  { %1015 = vmatmul.msk.f32.vlgmr.msrb.gmra.mxu1 %vm54_vm0, %v33_v9  ;;  %1031 = vmatmul.msk.f32.vlgmr.msrb.gmra.mxu2 %vm54_vm0, %v236_v10 }
  0x15   :  { %1000 = vmatmul.msk.f32.gmra.mxu0 %vm54_vm0, %v236_v10 }
  0x19   :  { %1016 = vmatmul.msk.f32.gmra.mxu1 %vm54_vm0, %v34_v8  ;;  %1032 = vmatmul.msk.f32.gmra.mxu2 %vm54_vm0, %v237_v11 }
  0x1d   :  { %1001 = vmatmul.msk.f32.gmra.mxu0 %vm54_vm0, %v237_v11 }
  0x21   :  { %1017 = vmatmul.msk.f32.gmra.mxu1 %vm54_vm0, %v236_v10  ;;  %1033 = vmatmul.msk.f32.gmra.mxu2 %vm54_vm0, %v238_v12 }
  0x25   :  { %1002 = vmatmul.msk.f32.gmra.mxu0 %vm54_vm0, %v238_v12 }
  0x29   :  { %1018 = vmatmul.msk.f32.gmra.mxu1 %vm54_vm0, %v237_v11  ;;  %1034 = vmatmul.msk.f32.gmra.mxu2 %vm54_vm0, %v239_v13 }
  0x2d   :  { %1003 = vmatmul.msk.f32.gmra.mxu0 %vm54_vm0, %v239_v13 }
  0x31   :  { %1019 = vmatmul.msk.f32.gmra.mxu1 %vm54_vm0, %v238_v12  ;;  %1035 = vmatmul.msk.f32.gmra.mxu2 %vm54_vm0, %v240_v14 }
  0x35   :  { %1004 = vmatmul.msk.f32.gmra.mxu0 %vm54_vm0, %v240_v14 }
  0x39   :  { %1020 = vmatmul.msk.f32.gmra.mxu1 %vm54_vm0, %v239_v13  ;;  %1036 = vmatmul.msk.f32.gmra.mxu2 %vm54_vm0, %v241_v15 }
  0x3d   :  { %1005 = vmatmul.msk.f32.gmra.mxu0 %vm54_vm0, %v241_v15 }
  0x41   :  { %1021 = vmatmul.msk.f32.gmra.mxu1 %vm54_vm0, %v240_v14  ;;  %1037 = vmatmul.msk.f32.gmra.mxu2 %vm54_vm0, %v242_v16 }
  0x45   :  { %1006 = vmatmul.msk.f32.gmra.mxu0 %vm54_vm0, %v242_v16 }
  0x49   :  { %1022 = vmatmul.msk.f32.gmra.mxu1 %vm54_vm0, %v241_v15  ;;  %1038 = vmatmul.msk.f32.gmra.mxu2 %vm54_vm0, %v243_v17 }
  0x4d   :  { %1007 = vmatmul.msk.f32.gmra.mxu0 %vm54_vm0, %v243_v17 }
  0x51   :  { %1023 = vmatmul.msk.f32.gmra.mxu1 %vm54_vm0, %v242_v16  ;;  %1039 = vmatmul.msk.f32.gmra.mxu2 %vm54_vm0, %v244_v18 }
  0x55   :  { %1008 = vmatmul.msk.f32.gmra.mxu0 %vm54_vm0, %v244_v18 }
  0x59   :  { %1024 = vmatmul.msk.f32.gmra.mxu1 %vm54_vm0, %v243_v17  ;;  %1040 = vmatmul.msk.f32.gmra.mxu2 %vm54_vm0, %v245_v19 }
  0x5d   :  { %1009 = vmatmul.msk.f32.gmra.mxu0 %vm54_vm0, %v245_v19 }
  0x61   :  { %1025 = vmatmul.msk.f32.gmra.mxu1 %vm54_vm0, %v244_v18  ;;  %1041 = vmatmul.msk.f32.gmra.mxu2 %vm54_vm0, %v246_v20 }
  0x65   :  { %1010 = vmatmul.msk.f32.gmra.mxu0 %vm54_vm0, %v246_v20 }
  0x69   :  { %1026 = vmatmul.msk.f32.gmra.mxu1 %vm54_vm0, %v245_v19  ;;  %1042 = vmatmul.msk.f32.gmra.mxu2 %vm54_vm0, %v247_v21 }
  0x6d   :  { %1011 = vmatmul.msk.f32.gmra.mxu0 %vm54_vm0, %v247_v21 }
  0x71   :  { %1027 = vmatmul.msk.f32.gmra.mxu1 %vm54_vm0, %v246_v20  ;;  %1043 = vmatmul.msk.f32.gmra.mxu2 %vm54_vm0, %v248_v22 }
  0x75   :  { %1012 = vmatmul.msk.f32.gmra.mxu0 %vm54_vm0, %v248_v22 }
  0x79   :  { %1028 = vmatmul.msk.f32.gmra.mxu1 %vm54_vm0, %v247_v21  ;;  %1044 = vmatmul.msk.f32.gmra.mxu2 %vm54_vm0, %v1139_v2 }
  0x81   :  { %1029 = vmatmul.msk.f32.gmra.mxu1 %vm54_vm0, %v248_v22  ;;  %1045 = vmatmul.msk.f32.gmra.mxu2 %vm54_vm0, %v1144_v3 }
  0x86   :  { %v1241_v23 = vpop.f32.mrf.mxu1 }
  0x89   :  { %1030 = vmatmul.msk.f32.gmra.mxu1 %vm54_vm0, %v1139_v2  ;;  %1046 = vmatmul.msk.f32.gmra.mxu2 %vm54_vm0, %v251_v24 }
  0x8a   :  { %v120_v25 = vpop.f32.mrf.mxu0 }
  0x8c   :  { %v1249_v26 = vpop.f32.mrf.mxu2 }
  0x8e   :  { %v188_v27 = vpop.f32.mrf.mxu1 }
  0x8f   :  { %v189_v30 = vadd.f32 %v188_v27, %v120_v25 }
  0x92   :  { %v123_v28 = vpop.f32.mrf.mxu0 }
  0x94   :  { %v319_v29 = vpop.f32.mrf.mxu2 }
  0x95   :  { %v367_v32 = vadd.f32 %v319_v29, %v189_v30 }
  0x96   :  { %v191_v31 = vpop.f32.mrf.mxu1 }
  0x97   :  { %v192_v34 = vadd.f32 %v191_v31, %v123_v28  ;;  %v385_v37 = vadd.f32 %v1251_v33, %v367_v32 }
  0x99   :  { %v401_v41 = vmax.f32 %v385_v37, 0.0 }
  0x9a   :  { %v126_v35 = vpop.f32.mrf.mxu0 }
  0x9c   :  { %v322_v36 = vpop.f32.mrf.mxu2 }
  0x9d   :  { %v368_v38 = vadd.f32 %v322_v36, %v192_v34 }
  0x9e   :  { %v194_v39 = vpop.f32.mrf.mxu1 }
  0x9f   :  { %v386_v40 = vadd.f32 %v1251_v33, %v368_v38  ;;  %v195_v46 = vadd.f32 %v194_v39, %v126_v35  ;;  %v505_v35 = vld [vmem:[#allocation2 + $0x130] sm:$0xff]  ;;  %v504_v39 = vld [vmem:[#allocation2 + $0x128] sm:$0xff] }
  0xa0   :  { %506 = vmatpush.msra.mxu3 %v505_v35 }
  0xa1   :  { %v402_v42 = vmax.f32 %v386_v40, 0.0 }
  0xa2   :  { %v129_v43 = vpop.f32.mrf.mxu0  ;;  %507 = vmatpush.msra.mxu3 %v504_v39  ;;  %v592_v39 = vld [vmem:[#allocation2 + $0x158] sm:$0xff] }
  0xa3   :  { %v1255_v44 = vmax.f32 %v401_v41, %v402_v42  ;;  %v503_v42 = vld [vmem:[#allocation2 + $0x120] sm:$0xff] }
  0xa4   :  { %v325_v45 = vpop.f32.mrf.mxu2  ;;  %508 = vmatpush.msra.mxu3 %v503_v42  ;;  %v591_v42 = vld [vmem:[#allocation2 + $0x150] sm:$0xff] }
  0xa5   :  { %433 = vrot.lane.b32.xlu0 %v1255_v44, %s1104_s0  ;;  %v369_v48 = vadd.f32 %v325_v45, %v195_v46  ;;  %v502_v46 = vld [vmem:[#allocation2 + $0x118] sm:$0xff] }
  0xa6   :  { %v197_v47 = vpop.f32.mrf.mxu1  ;;  %509 = vmatpush.msra.mxu3 %v502_v46 }
  0xa7   :  { %v198_v49 = vadd.f32 %v197_v47, %v129_v43  ;;  %v387_v52 = vadd.f32 %v1251_v33, %v369_v48 }
  0xa9   :  { %v403_v56 = vmax.f32 %v387_v52, 0.0  ;;  %v500_v52 = vld [vmem:[#allocation2 + $0x108] sm:$0xff] }
  0xaa   :  { %v132_v50 = vpop.f32.mrf.mxu0 }
  0xac   :  { %v328_v51 = vpop.f32.mrf.mxu2 }
  0xad   :  { %v370_v53 = vadd.f32 %v328_v51, %v198_v49  ;;  %v501_v49 = vld [vmem:[#allocation2 + $0x110] sm:$0xff] }
  0xae   :  { %v200_v54 = vpop.f32.mrf.mxu1  ;;  %510 = vmatpush.msra.mxu3 %v501_v49  ;;  %v589_v49 = vld [vmem:[#allocation2 + $0x140] sm:$0xff] }
  0xaf   :  { %v388_v55 = vadd.f32 %v1251_v33, %v370_v53  ;;  %v201_v61 = vadd.f32 %v200_v54, %v132_v50  ;;  %v499_v54 = vld [vmem:[#allocation2 + $0x100] sm:$0xff] }
  0xb0   :  { %511 = vmatpush.msra.mxu3 %v500_v52  ;;  %v588_v52 = vld [vmem:[#allocation2 + $0x138] sm:$0xff] }
  0xb1   :  { %v404_v57 = vmax.f32 %v388_v55, 0.0 }
  0xb2   :  { %v135_v58 = vpop.f32.mrf.mxu0  ;;  %512 = vmatpush.msra.mxu3 %v499_v54 }
  0xb3   :  { %v1261_v59 = vmax.f32 %v403_v56, %v404_v57  ;;  %v498_v57 = vld [vmem:[#allocation2 + $0xf8] sm:$0xff] }
  0xb4   :  { %v331_v60 = vpop.f32.mrf.mxu2  ;;  %513 = vmatpush.msra.mxu3 %v498_v57 }
  0xb5   :  { %435 = vrot.lane.b32.xlu0 %v1261_v59, %s1104_s0  ;;  %v371_v63 = vadd.f32 %v331_v60, %v201_v61  ;;  %v603_v60 = vld [vmem:[#allocation2 + $0x1b0] sm:$0xff] }
  0xb6   :  { %v203_v62 = vpop.f32.mrf.mxu1  ;;  %604 = vmatpush.msrb.mxu0 %v603_v60 }
  0xb7   :  { %v204_v0 = vadd.f32 %v203_v62, %v135_v58  ;;  %v389_v3 = vadd.f32 %v1251_v33, %v371_v63  ;;  %v497_v58 = vld [vmem:[#allocation2 + $0xf0] sm:$0xff] }
  0xb8   :  { %514 = vmatpush.msra.mxu3 %v497_v58 }
  0xb9   :  { %v405_v7 = vmax.f32 %v389_v3, 0.0 }
  0xba   :  { %v138_v1 = vpop.f32.mrf.mxu0 }
  0xbc   :  { %v334_v2 = vpop.f32.mrf.mxu2 }
  0xbd   :  { %v372_v4 = vadd.f32 %v334_v2, %v204_v0  ;;  %v602_v2 = vld [vmem:[#allocation2 + $0x1a8] sm:$0xff] }
  0xbe   :  { %v206_v5 = vpop.f32.mrf.mxu1  ;;  %605 = vmatpush.msrb.mxu0 %v602_v2 }
  0xbf   :  { %v390_v6 = vadd.f32 %v1251_v33, %v372_v4  ;;  %v207_v12 = vadd.f32 %v206_v5, %v138_v1  ;;  %v496_v1 = vld [vmem:[#allocation2 + $0xe8] sm:$0xff]  ;;  %v495_v5 = vld [vmem:[#allocation2 + $0xe0] sm:$0xff] }
  0xc0   :  { %515 = vmatpush.msra.mxu3 %v496_v1  ;;  %v489_v1 = vld [vmem:[#allocation2 + $0xb0] sm:$0xff] }
  0xc1   :  { %v406_v8 = vmax.f32 %v390_v6, 0.0  ;;  %v601_v6 = vld [vmem:[#allocation2 + $0x1a0] sm:$0xff] }
  0xc2   :  { %v141_v9 = vpop.f32.mrf.mxu0  ;;  %516 = vmatpush.msra.mxu3 %v495_v5  ;;  %606 = vmatpush.msrb.mxu0 %v601_v6  ;;  %v487_v5 = vld [vmem:[#allocation2 + $0xa0] sm:$0xff]  ;;  %v486_v6 = vld [vmem:[#allocation2 + $0x98] sm:$0xff] }
  0xc3   :  { %v1267_v10 = vmax.f32 %v405_v7, %v406_v8 }
  0xc4   :  { %v337_v11 = vpop.f32.mrf.mxu2 }
  0xc5   :  { %437 = vrot.lane.b32.xlu1 %v1267_v10, %s1104_s0  ;;  %v373_v14 = vadd.f32 %v337_v11, %v207_v12  ;;  %v600_v11 = vld [vmem:[#allocation2 + $0x198] sm:$0xff]  ;;  %v493_v12 = vld [vmem:[#allocation2 + $0xd0] sm:$0xff] }
  0xc6   :  { %v209_v13 = vpop.f32.mrf.mxu1  ;;  %607 = vmatpush.msrb.mxu0 %v600_v11 }
  0xc7   :  { %v210_v15 = vadd.f32 %v209_v13, %v141_v9  ;;  %v391_v18 = vadd.f32 %v1251_v33, %v373_v14  ;;  %v494_v9 = vld [vmem:[#allocation2 + $0xd8] sm:$0xff]  ;;  %v599_v13 = vld [vmem:[#allocation2 + $0x190] sm:$0xff] }
  0xc8   :  { %517 = vmatpush.msra.mxu3 %v494_v9  ;;  %608 = vmatpush.msrb.mxu0 %v599_v13  ;;  %v482_v9 = vld [vmem:[#allocation2 + $0x78] sm:$0xff] }
  0xc9   :  { %v407_v22 = vmax.f32 %v391_v18, 0.0  ;;  %v598_v18 = vld [vmem:[#allocation2 + $0x188] sm:$0xff] }
  0xca   :  { %v144_v16 = vpop.f32.mrf.mxu0  ;;  %518 = vmatpush.msra.mxu3 %v493_v12  ;;  %609 = vmatpush.msrb.mxu0 %v598_v18 }
  0xcc   :  { %v340_v17 = vpop.f32.mrf.mxu2 }
  0xcd   :  { %v374_v19 = vadd.f32 %v340_v17, %v210_v15  ;;  %v492_v17 = vld [vmem:[#allocation2 + $0xc8] sm:$0xff] }
  0xce   :  { %v212_v20 = vpop.f32.mrf.mxu1  ;;  %519 = vmatpush.msra.mxu3 %v492_v17 }
  0xcf   :  { %v392_v21 = vadd.f32 %v1251_v33, %v374_v19  ;;  %v213_v29 = vadd.f32 %v212_v20, %v144_v16 }
  0xd1   :  { %v408_v24 = vmax.f32 %v392_v21, 0.0  ;;  %v491_v21 = vld [vmem:[#allocation2 + $0xc0] sm:$0xff] }
  0xd2   :  { %v147_v25 = vpop.f32.mrf.mxu0  ;;  %520 = vmatpush.msra.mxu3 %v491_v21  ;;  %v480_v21 = vld [vmem:[#allocation2 + $0x68] sm:$0xff] }
  0xd3   :  { %v1273_v27 = vmax.f32 %v407_v22, %v408_v24  ;;  %v597_v22 = vld [vmem:[#allocation2 + $0x180] sm:$0xff]  ;;  %v490_v24 = vld [vmem:[#allocation2 + $0xb8] sm:$0xff] }
  0xd4   :  { %v343_v28 = vpop.f32.mrf.mxu2  ;;  %610 = vmatpush.msrb.mxu0 %v597_v22  ;;  %521 = vmatpush.msra.mxu3 %v490_v24  ;;  %v478_v22 = vld [vmem:[#allocation2 + $0x58] sm:$0xff]  ;;  %v477_v24 = vld [vmem:[#allocation2 + $0x50] sm:$0xff] }
  0xd5   :  { %439 = vrot.lane.b32.xlu1 %v1273_v27, %s1104_s0  ;;  %v375_v31 = vadd.f32 %v343_v28, %v213_v29 }
  0xd6   :  { %v215_v30 = vpop.f32.mrf.mxu1  ;;  %547 = vmatpush.msrb.mxu3 %v489_v1 }
  0xd7   :  { %v216_v32 = vadd.f32 %v215_v30, %v147_v25  ;;  %v393_v37 = vadd.f32 %v1251_v33, %v375_v31  ;;  %v596_v25 = vld [vmem:[#allocation2 + $0x178] sm:$0xff]  ;;  %v595_v30 = vld [vmem:[#allocation2 + $0x170] sm:$0xff]  ;;  %v594_v31 = vld [vmem:[#allocation2 + $0x168] sm:$0xff] }
  0xd8   :  { %611 = vmatpush.msrb.mxu0 %v596_v25  ;;  %v475_v25 = vld [vmem:[#allocation2 + $0x40] sm:$0xff] }
  0xd9   :  { %v409_v43 = vmax.f32 %v393_v37, 0.0 }
  0xda   :  { %v150_v34 = vpop.f32.mrf.mxu0  ;;  %612 = vmatpush.msrb.mxu0 %v595_v30 }
  0xdc   :  { %v346_v36 = vpop.f32.mrf.mxu2  ;;  %613 = vmatpush.msrb.mxu0 %v594_v31 }
  0xdd   :  { %v376_v38 = vadd.f32 %v346_v36, %v216_v32  ;;  %v593_v36 = vld [vmem:[#allocation2 + $0x160] sm:$0xff] }
  0xde   :  { %v218_v40 = vpop.f32.mrf.mxu1  ;;  %614 = vmatpush.msrb.mxu0 %v593_v36 }
  0xdf   :  { %v394_v41 = vadd.f32 %v1251_v33, %v376_v38  ;;  %v219_v51 = vadd.f32 %v218_v40, %v150_v34 }
  0xe0   :  { %615 = vmatpush.msrb.mxu0 %v592_v39 }
  0xe1   :  { %v410_v45 = vmax.f32 %v394_v41, 0.0 }
  0xe2   :  { %v153_v47 = vpop.f32.mrf.mxu0  ;;  %616 = vmatpush.msrb.mxu0 %v591_v42 }
  0xe3   :  { %v1279_v48 = vmax.f32 %v409_v43, %v410_v45  ;;  %v590_v45 = vld [vmem:[#allocation2 + $0x148] sm:$0xff] }
  0xe4   :  { %v349_v50 = vpop.f32.mrf.mxu2  ;;  %617 = vmatpush.msrb.mxu0 %v590_v45 }
  0xe5   :  { %441 = vrot.lane.b32.xlu2 %v1279_v48, %s1104_s0  ;;  %v377_v55 = vadd.f32 %v349_v50, %v219_v51 }
  0xe6   :  { %v221_v53 = vpop.f32.mrf.mxu1  ;;  %618 = vmatpush.msrb.mxu0 %v589_v49 }
  0xe7   :  { %v222_v56 = vadd.f32 %v221_v53, %v153_v47  ;;  %v395_v63 = vadd.f32 %v1251_v33, %v377_v55 }
  0xe8   :  { %619 = vmatpush.msrb.mxu0 %v588_v52 }
  0xe9   :  { %v411_v7 = vmax.f32 %v395_v63, 0.0 }
  0xea   :  { %v156_v62 = vpop.f32.mrf.mxu0 }
  0xec   :  { %v352_v61 = vpop.f32.mrf.mxu2 }
  0xed   :  { %v378_v0 = vadd.f32 %v352_v61, %v222_v56 }
  0xee   :  { %v224_v3 = vpop.f32.mrf.mxu1 }
  0xef   :  { %v396_v4 = vadd.f32 %v1251_v33, %v378_v0  ;;  %v225_v16 = vadd.f32 %v224_v3, %v156_v62 }
  0xf1   :  { %v412_v8 = vmax.f32 %v396_v4, 0.0  ;;  %v488_v4 = vld [vmem:[#allocation2 + $0xa8] sm:$0xff] }
  0xf2   :  { %v159_v20 = vpop.f32.mrf.mxu0  ;;  %548 = vmatpush.msrb.mxu3 %v488_v4 }
  0xf3   :  { %v1285_v14 = vmax.f32 %v411_v7, %v412_v8  ;;  %v484_v7 = vld [vmem:[#allocation2 + $0x88] sm:$0xff]  ;;  %v483_v8 = vld [vmem:[#allocation2 + $0x80] sm:$0xff] }
  0xf4   :  { %v355_v15 = vpop.f32.mrf.mxu2  ;;  %549 = vmatpush.msrb.mxu3 %v487_v5 }
  0xf5   :  { %443 = vrot.lane.b32.xlu2 %v1285_v14, %s1104_s0  ;;  %v379_v28 = vadd.f32 %v355_v15, %v225_v16 }
  0xf6   :  { %v227_v19 = vpop.f32.mrf.mxu1  ;;  %550 = vmatpush.msrb.mxu3 %v486_v6  ;;  %v730_v6 = vld [vmem:[#allocation2 + $0x2b0] sm:$0xff] }
  0xf7   :  { %v228_v29 = vadd.f32 %v227_v19, %v159_v20  ;;  %v397_v34 = vadd.f32 %v1251_v33, %v379_v28  ;;  %v481_v20 = vld [vmem:[#allocation2 + $0x70] sm:$0xff]  ;;  %v474_v28 = vld [vmem:[#allocation2 + $0x38] sm:$0xff] }
  0xf9   :  { %v413_v40 = vmax.f32 %v397_v34, 0.0 }
  0xfc   :  { %v358_v32 = vpop.f32.mrf.mxu2 }
  0xfd   :  { %v380_v35 = vadd.f32 %v358_v32, %v228_v29 }
  0xfe   :  { %v230_v37 = vpop.f32.mrf.mxu1 }
  0xff   :  { %v398_v38 = vadd.f32 %v1251_v33, %v380_v35  ;;  %v231_v47 = vadd.f32 %v230_v37, %v1241_v23  ;;  %v1105_v35 = vmov 0.0  }
 0x101   :  { %v414_v41 = vmax.f32 %v398_v38, 0.0 }
 0x103   :  { %v1291_v43 = vmax.f32 %v413_v40, %v414_v41 }
 0x104   :  { %v361_v46 = vpop.f32.mrf.mxu2 }
 0x105   :  { %445 = vrot.lane.b32.xlu0 %v1291_v43, %s1104_s0  ;;  %v381_v51 = vadd.f32 %v361_v46, %v231_v47 }
 0x106   :  { %v233_v50 = vpop.f32.mrf.mxu1 }
 0x107   :  { %v234_v53 = vadd.f32 %v233_v50, %v1249_v26  ;;  %v399_v55 = vadd.f32 %v1251_v33, %v381_v51 }
 0x109   :  { %v415_v58 = vmax.f32 %v399_v55, 0.0 }
 0x10c   :  { %v364_v54 = vpop.f32.mrf.mxu2 }
 0x10d   :  { %v382_v56 = vadd.f32 %v364_v54, %v234_v53 }
 0x10f   :  { %v400_v57 = vadd.f32 %v1251_v33, %v382_v56 }
 0x111   :  { %v416_v60 = vmax.f32 %v400_v57, 0.0 }
 0x113   :  { %v1299_v61 = vmax.f32 %v415_v58, %v416_v60  ;;  %v1332_v58 = vld [vmem:[#allocation2 + $0x1b8] ss:$0 sm:$0xff] }
 0x115   :  { %447 = vrot.lane.b32.xlu1 %v1299_v61, %s1104_s0 }
 0x117   :  { %v434_v23 = vpop.permute.xlu0 %433 }
 0x118   :  { %v458_v62 = vsel %vm457_vm1, %v434_v23, 0.0 }
 0x119   :  { %v1305_v63 = vmax.f32 %v1255_v44, %v458_v62 }
 0x11b   :  { %522 = vmatmul.f32.vlgmr.msra.gmra.mxu3 %v1305_v63 }
 0x127   :  { %v436_v26 = vpop.permute.xlu0 %435 }
 0x128   :  { %v459_v0 = vsel %vm457_vm1, %v436_v26, 0.0  ;;  %v715_v26 = vld [vmem:[#allocation2 + $0x238] sm:$0xff] }
 0x129   :  { %v1310_v33 = vmax.f32 %v1261_v59, %v459_v0  ;;  %v485_v59 = vld [vmem:[#allocation2 + $0x90] sm:$0xff]  ;;  %766 = vmatpush.msra.mxu1 %v715_v26 }
 0x12a   :  { %551 = vmatpush.msrb.mxu3 %v485_v59  ;;  %v714_v59 = vld [vmem:[#allocation2 + $0x230] sm:$0xff] }
 0x12b   :  { %525 = vmatmul.f32.gmra.mxu3 %v1310_v33  ;;  %620 = vmatmul.f32.vlgmr.msrb.gmra.mxu0 %v1310_v33 }
 0x12c   :  { %552 = vmatpush.msrb.mxu3 %v484_v7  ;;  %767 = vmatpush.msra.mxu1 %v714_v59  ;;  %v742_v59 = vld [vmem:[#allocation2 + $0x310] sm:$0xff] }
 0x12e   :  { %553 = vmatpush.msrb.mxu3 %v483_v8 }
 0x130   :  { %554 = vmatpush.msrb.mxu3 %v482_v9 }
 0x132   :  { %555 = vmatpush.msrb.mxu3 %v481_v20 }
 0x134   :  { %556 = vmatpush.msrb.mxu3 %v480_v21  ;;  %v726_v21 = vld [vmem:[#allocation2 + $0x290] sm:$0xff] }
 0x137   :  { %v438_v2 = vpop.permute.xlu1 %437 }
 0x138   :  { %v460_v3 = vsel %vm457_vm1, %v438_v2, 0.0 }
 0x139   :  { %v468_v44 = vmax.f32 %v1267_v10, %v460_v3 }
 0x13b   :  { %528 = vmatmul.f32.gmra.mxu3 %v468_v44  ;;  %623 = vmatmul.f32.gmra.mxu0 %v468_v44 }
 0x13f   :  { %v442_v13 = vpop.permute.xlu2 %441 }
 0x140   :  { %v462_v15 = vsel %vm457_vm1, %v442_v13, 0.0  ;;  %v729_v13 = vld [vmem:[#allocation2 + $0x2a8] sm:$0xff] }
 0x141   :  { %v470_v16 = vmax.f32 %v1279_v48, %v462_v15  ;;  %v476_v48 = vld [vmem:[#allocation2 + $0x48] sm:$0xff] }
 0x142   :  { %v713_v15 = vld [vmem:[#allocation2 + $0x228] sm:$0xff] }
 0x143   :  { %768 = vmatpush.msra.mxu1 %v713_v15  ;;  %v759_v15 = vld [vmem:[#allocation2 + $0x398] sm:$0xff] }
 0x147   :  { %v440_v11 = vpop.permute.xlu1 %439 }
 0x148   :  { %v461_v12 = vsel %vm457_vm1, %v440_v11, 0.0 }
 0x149   :  { %v469_v10 = vmax.f32 %v1273_v27, %v461_v12  ;;  %v479_v27 = vld [vmem:[#allocation2 + $0x60] sm:$0xff] }
 0x14a   :  { %557 = vmatpush.msrb.mxu3 %v479_v27  ;;  %v710_v27 = vld [vmem:[#allocation2 + $0x210] sm:$0xff] }
 0x14b   :  { %531 = vmatmul.f32.gmra.mxu3 %v469_v10  ;;  %626 = vmatmul.f32.gmra.mxu0 %v469_v10 }
 0x14c   :  { %558 = vmatpush.msrb.mxu3 %v478_v22 }
 0x14e   :  { %559 = vmatpush.msrb.mxu3 %v477_v24 }
 0x14f   :  { %v444_v17 = vpop.permute.xlu2 %443 }
 0x150   :  { %v463_v18 = vsel %vm457_vm1, %v444_v17, 0.0  ;;  %560 = vmatpush.msrb.mxu3 %v476_v48  ;;  %v712_v17 = vld [vmem:[#allocation2 + $0x220] sm:$0xff]  ;;  %v747_v48 = vld [vmem:[#allocation2 + $0x338] sm:$0xff] }
 0x151   :  { %v471_v19 = vmax.f32 %v1285_v14, %v463_v18  ;;  %v727_v18 = vld [vmem:[#allocation2 + $0x298] sm:$0xff]  ;;  %769 = vmatpush.msra.mxu1 %v712_v17  ;;  %v758_v17 = vld [vmem:[#allocation2 + $0x390] sm:$0xff] }
 0x152   :  { %561 = vmatpush.msrb.mxu3 %v475_v25 }
 0x153   :  { %534 = vmatmul.f32.gmra.mxu3 %v470_v16  ;;  %629 = vmatmul.f32.gmra.mxu0 %v470_v16 }
 0x154   :  { %562 = vmatpush.msrb.mxu3 %v474_v28  ;;  %v725_v28 = vld [vmem:[#allocation2 + $0x288] sm:$0xff] }
 0x156   :  { %806 = vmatpush.msra.mxu3 %v747_v48 }
 0x15b   :  { %537 = vmatmul.f32.gmra.mxu3 %v471_v19  ;;  %632 = vmatmul.f32.gmra.mxu0 %v471_v19 }
 0x177   :  { %v446_v29 = vpop.permute.xlu0 %445 }
 0x178   :  { %v464_v14 = vsel %vm457_vm1, %v446_v29, 0.0  ;;  %v709_v29 = vld [vmem:[#allocation2 + $0x208] sm:$0xff] }
 0x179   :  { %v472_v30 = vmax.f32 %v1291_v43, %v464_v14  ;;  %v746_v14 = vld [vmem:[#allocation2 + $0x330] sm:$0xff] }
 0x17a   :  { %807 = vmatpush.msra.mxu3 %v746_v14 }
 0x17b   :  { %540 = vmatmul.f32.gmra.mxu3 %v472_v30  ;;  %635 = vmatmul.f32.gmra.mxu0 %v472_v30 }
 0x187   :  { %v448_v31 = vpop.permute.xlu1 %447 }
 0x188   :  { %v465_v32 = vsel %vm457_vm1, %v448_v31, 0.0 }
 0x189   :  { %v473_v34 = vmax.f32 %v1299_v61, %v465_v32  ;;  %v731_v61 = vld [vmem:[#allocation2 + $0x2b8] sm:$0xff]  ;;  %v724_v32 = vld [vmem:[#allocation2 + $0x280] sm:$0xff] }
 0x18a   :  { %786 = vmatpush.msra.mxu2 %v731_v61 }
 0x18b   :  { %543 = vmatmul.f32.gmra.mxu3 %v473_v34  ;;  %638 = vmatmul.f32.gmra.mxu0 %v473_v34  ;;  %v708_v34 = vld [vmem:[#allocation2 + $0x200] sm:$0xff] }
 0x18c   :  { %787 = vmatpush.msra.mxu2 %v730_v6  ;;  %v763_v6 = vld [vmem:[#allocation2 + $0x3b8] sm:$0xff] }
 0x18e   :  { %788 = vmatpush.msra.mxu2 %v729_v13  ;;  %v740_v13 = vld [vmem:[#allocation2 + $0x300] sm:$0xff] }
 0x193   :  { %563 = vmatmul.f32.vlgmr.msrb.gmra.mxu3 %v1105_v35  ;;  %641 = vmatmul.f32.gmra.mxu0 %v1105_v35 }
 0x19b   :  { %566 = vmatmul.f32.gmra.mxu3 %v1305_v63 }
 0x19e   :  { %v523_v36 = vpop.f32.mrf.mxu3 }
 0x1a3   :  { %569 = vmatmul.f32.gmra.mxu3 %v1310_v33 }
 0x1a8   :  { %v621_v45 = vpop.f32.mrf.mxu0 }
 0x1ab   :  { %572 = vmatmul.f32.gmra.mxu3 %v468_v44 }
 0x1ae   :  { %v526_v37 = vpop.f32.mrf.mxu3 }
 0x1b3   :  { %575 = vmatmul.f32.gmra.mxu3 %v469_v10 }
 0x1b8   :  { %v624_v47 = vpop.f32.mrf.mxu0 }
 0x1bb   :  { %578 = vmatmul.f32.gmra.mxu3 %v470_v16  ;;  %v728_v16 = vld [vmem:[#allocation2 + $0x2a0] sm:$0xff] }
 0x1bc   :  { %789 = vmatpush.msra.mxu2 %v728_v16  ;;  %v739_v16 = vld [vmem:[#allocation2 + $0x2f8] sm:$0xff] }
 0x1be   :  { %v529_v38 = vpop.f32.mrf.mxu3  ;;  %790 = vmatpush.msra.mxu2 %v727_v18  ;;  %v738_v18 = vld [vmem:[#allocation2 + $0x2f0] sm:$0xff] }
 0x1c0   :  { %791 = vmatpush.msra.mxu2 %v726_v21  ;;  %v735_v21 = vld [vmem:[#allocation2 + $0x2d8] sm:$0xff] }
 0x1c2   :  { %792 = vmatpush.msra.mxu2 %v725_v28 }
 0x1c3   :  { %581 = vmatmul.f32.gmra.mxu3 %v471_v19  ;;  %v711_v19 = vld [vmem:[#allocation2 + $0x218] sm:$0xff] }
 0x1c4   :  { %770 = vmatpush.msra.mxu1 %v711_v19  ;;  %793 = vmatpush.msra.mxu2 %v724_v32  ;;  %v737_v19 = vld [vmem:[#allocation2 + $0x2e8] sm:$0xff]  ;;  %v732_v32 = vld [vmem:[#allocation2 + $0x2c0] sm:$0xff] }
 0x1c6   :  { %771 = vmatpush.msra.mxu1 %v710_v27  ;;  %v734_v27 = vld [vmem:[#allocation2 + $0x2d0] sm:$0xff] }
 0x1c8   :  { %v627_v50 = vpop.f32.mrf.mxu0  ;;  %772 = vmatpush.msra.mxu1 %v709_v29 }
 0x1ca   :  { %773 = vmatpush.msra.mxu1 %v708_v34  ;;  %v756_v34 = vld [vmem:[#allocation2 + $0x380] sm:$0xff] }
 0x1cb   :  { %584 = vmatmul.f32.gmra.mxu3 %v472_v30 }
 0x1ce   :  { %v532_v39 = vpop.f32.mrf.mxu3 }
 0x1d0   :  { %v630_v56 = vpop.f32.mrf.mxu0 }
 0x1d6   :  { %v535_v40 = vpop.f32.mrf.mxu3 }
 0x1d8   :  { %v633_v7 = vpop.f32.mrf.mxu0 }
 0x1de   :  { %v538_v41 = vpop.f32.mrf.mxu3 }
 0x1f8   :  { %v636_v22 = vpop.f32.mrf.mxu0 }
 0x1fe   :  { %v1328_v42 = vpop.f32.mrf.mxu3 }
 0x20e   :  { %v1330_v43 = vpop.f32.mrf.mxu3 }
 0x216   :  { %v564_v46 = vpop.f32.mrf.mxu3 }
 0x217   :  { %v565_v53 = vadd.f32 %v564_v46, %v523_v36  ;;  %v707_v36 = vld [vmem:[#allocation2 + $0x1f8] sm:$0xff] }
 0x218   :  { %774 = vmatpush.msra.mxu1 %v707_v36  ;;  %v754_v36 = vld [vmem:[#allocation2 + $0x370] sm:$0xff] }
 0x219   :  { %v645_v57 = vadd.f32 %v621_v45, %v565_v53  ;;  %v639_v45 = vpop.f32.mrf.mxu0  ;;  %v720_v53 = vld [vmem:[#allocation2 + $0x260] sm:$0xff] }
 0x21b   :  { %v655_v0 = vadd.f32 %v1332_v58, %v645_v57 }
 0x21d   :  { %v663_v44 = vmax.f32 %v655_v0, 0.0 }
 0x21e   :  { %v567_v49 = vpop.f32.mrf.mxu3 }
 0x21f   :  { %v568_v52 = vadd.f32 %v567_v49, %v526_v37  ;;  %v723_v37 = vld [vmem:[#allocation2 + $0x278] sm:$0xff]  ;;  %v705_v49 = vld [vmem:[#allocation2 + $0x1e8] sm:$0xff] }
 0x220   :  { %794 = vmatpush.msra.mxu2 %v723_v37  ;;  %v753_v37 = vld [vmem:[#allocation2 + $0x368] sm:$0xff] }
 0x221   :  { %v646_v55 = vadd.f32 %v624_v47, %v568_v52  ;;  %v704_v52 = vld [vmem:[#allocation2 + $0x1e0] sm:$0xff] }
 0x223   :  { %v656_v62 = vadd.f32 %v1332_v58, %v646_v55  ;;  %v719_v55 = vld [vmem:[#allocation2 + $0x258] sm:$0xff] }
 0x225   :  { %v664_v2 = vmax.f32 %v656_v62, 0.0 }
 0x226   :  { %v570_v51 = vpop.f32.mrf.mxu3 }
 0x227   :  { %v571_v54 = vadd.f32 %v570_v51, %v529_v38  ;;  %v1338_v9 = vmax.f32 %v663_v44, %v664_v2  ;;  %v701_v2 = vld [vmem:[#allocation2 + $0x1c8] sm:$0xff]  ;;  %v700_v44 = vld [vmem:[#allocation2 + $0x1c0] sm:$0xff] }
 0x229   :  { %v647_v60 = vadd.f32 %v627_v50, %v571_v54  ;;  %v721_v50 = vld [vmem:[#allocation2 + $0x268] sm:$0xff]  ;;  %v703_v54 = vld [vmem:[#allocation2 + $0x1d8] sm:$0xff] }
 0x22b   :  { %v657_v33 = vadd.f32 %v1332_v58, %v647_v60  ;;  %v642_v60 = vpop.f32.mrf.mxu0 }
 0x22d   :  { %v665_v4 = vmax.f32 %v657_v33, 0.0  ;;  %v702_v33 = vld [vmem:[#allocation2 + $0x1d0] sm:$0xff] }
 0x22e   :  { %v573_v23 = vpop.f32.mrf.mxu3 }
 0x22f   :  { %v574_v63 = vadd.f32 %v573_v23, %v532_v39 }
 0x231   :  { %v648_v1 = vadd.f32 %v630_v56, %v574_v63 }
 0x233   :  { %v658_v3 = vadd.f32 %v1332_v58, %v648_v1  ;;  %v718_v1 = vld [vmem:[#allocation2 + $0x250] sm:$0xff] }
 0x235   :  { %v666_v5 = vmax.f32 %v658_v3, 0.0  ;;  %v717_v3 = vld [vmem:[#allocation2 + $0x248] sm:$0xff] }
 0x236   :  { %v576_v8 = vpop.f32.mrf.mxu3 }
 0x237   :  { %v1340_v11 = vmax.f32 %v665_v4, %v666_v5  ;;  %v577_v12 = vadd.f32 %v576_v8, %v535_v40  ;;  %v706_v40 = vld [vmem:[#allocation2 + $0x1f0] sm:$0xff]  ;;  %v716_v4 = vld [vmem:[#allocation2 + $0x240] sm:$0xff]  ;;  %v743_v5 = vld [vmem:[#allocation2 + $0x318] sm:$0xff] }
 0x238   :  { %775 = vmatpush.msra.mxu1 %v706_v40  ;;  %v761_v8 = vld [vmem:[#allocation2 + $0x3a8] sm:$0xff]  ;;  %v748_v40 = vld [vmem:[#allocation2 + $0x340] sm:$0xff] }
 0x239   :  { %v1064_v10 = vpack.i.bf16 %v1338_v9, %v1340_v11  ;;  %v649_v20 = vadd.f32 %v633_v7, %v577_v12  ;;  %v762_v7 = vld [vmem:[#allocation2 + $0x3b0] sm:$0xff]  ;;  %v741_v12 = vld [vmem:[#allocation2 + $0x308] sm:$0xff] }
 0x23a   :  { %776 = vmatpush.msra.mxu1 %v705_v49 }
 0x23b   :  { %1065 = vrot.lane.b32.xlu2 %v1064_v10, %s1106_s30  ;;  %v659_v30 = vadd.f32 %v1332_v58, %v649_v20  ;;  %v760_v10 = vld [vmem:[#allocation2 + $0x3a0] sm:$0xff] }
 0x23c   :  { %777 = vmatpush.msra.mxu1 %v704_v52  ;;  %v736_v20 = vld [vmem:[#allocation2 + $0x2e0] sm:$0xff] }
 0x23d   :  { %v667_v38 = vmax.f32 %v659_v30, 0.0  ;;  %v733_v30 = vld [vmem:[#allocation2 + $0x2c8] sm:$0xff] }
 0x23e   :  { %v579_v24 = vpop.f32.mrf.mxu3  ;;  %778 = vmatpush.msra.mxu1 %v703_v54  ;;  %v855_v54 = vld [vmem:[#allocation2 + $0x3d0] sm:$0xff] }
 0x23f   :  { %v580_v25 = vadd.f32 %v579_v24, %v538_v41  ;;  %v722_v41 = vld [vmem:[#allocation2 + $0x270] sm:$0xff] }
 0x240   :  { %795 = vmatpush.msra.mxu2 %v722_v41  ;;  %779 = vmatpush.msra.mxu1 %v702_v33  ;;  %v848_v41 = vld [vmem:[%s1382_s1] sm:$0xff] }
 0x241   :  { %v650_v31 = vadd.f32 %v636_v22, %v580_v25 }
 0x242   :  { %796 = vmatpush.msra.mxu2 %v721_v50  ;;  %780 = vmatpush.msra.mxu1 %v701_v2 }
 0x243   :  { %v660_v35 = vadd.f32 %v1332_v58, %v650_v31  ;;  %v757_v31 = vld [vmem:[#allocation2 + $0x388] sm:$0xff]  ;;  %850 = vrot.lane.b32.xlu2 %v848_v41, %s1107_s7 }
 0x244   :  { %797 = vmatpush.msra.mxu2 %v720_v53  ;;  %781 = vmatpush.msra.mxu1 %v700_v44  ;;  %v856_v53 = vld [vmem:[#allocation2 + $0x3d8] sm:$0xf]  ;;  %v913_v44 = vld [vmem:[#allocation2 + $0x3f0] sm:$0xff] }
 0x245   :  { %v668_v39 = vmax.f32 %v660_v35, 0.0  ;;  %v755_v35 = vld [vmem:[#allocation2 + $0x378] sm:$0xff] }
 0x246   :  { %v582_v46 = vpop.f32.mrf.mxu3  ;;  %798 = vmatpush.msra.mxu2 %v719_v55  ;;  %826 = vmatpush.msrb.mxu1 %v763_v6  ;;  %v854_v55 = vld [vmem:[#allocation2 + $0x3c8] sm:$0xff] }
 0x247   :  { %v1347_v47 = vmax.f32 %v667_v38, %v668_v39  ;;  %v583_v51 = vadd.f32 %v582_v46, %v1328_v42  ;;  %v752_v38 = vld [vmem:[#allocation2 + $0x360] sm:$0xff]  ;;  %v749_v39 = vld [vmem:[#allocation2 + $0x348] sm:$0xff] }
 0x248   :  { %799 = vmatpush.msra.mxu2 %v718_v1  ;;  %827 = vmatpush.msrb.mxu1 %v762_v7  ;;  %v847_v1 = vld [vmem:[%s1383_s2] sm:$0xff]  ;;  %v966_v7 = vld [vmem:[#allocation2 + $0x428] sm:$0xff] }
 0x249   :  { %683 = vrot.lane.b32.xlu0 %v1347_v47, %s1106_s30  ;;  %v651_v56 = vadd.f32 %v639_v45, %v583_v51 }
 0x24a   :  { %800 = vmatpush.msra.mxu2 %v717_v3  ;;  %828 = vmatpush.msrb.mxu1 %v761_v8  ;;  %v915_v3 = vld [vmem:[#allocation2 + $0x400] sm:$0xff] }
 0x24b   :  { %v661_v42 = vadd.f32 %v1332_v58, %v651_v56  ;;  %v1071_v56 = vld [vmem:[#allocation2 + $0x3c0] ss:$0 sm:$0xff] }
 0x24c   :  { %801 = vmatpush.msra.mxu2 %v716_v4  ;;  %829 = vmatpush.msrb.mxu1 %v760_v10  ;;  %v912_v4 = vld [vmem:[#allocation2 + $0x3e8] sm:$0xff]  ;;  %v965_v8 = vld [vmem:[#allocation2 + $0x420] sm:$0xff]  ;;  %v964_v10 = vld [vmem:[#allocation2 + $0x418] sm:$0xff] }
 0x24d   :  { %v669_v63 = vmax.f32 %v661_v42, 0.0 }
 0x24e   :  { %v585_v57 = vpop.f32.mrf.mxu3  ;;  %830 = vmatpush.msrb.mxu1 %v759_v15  ;;  %1047 = vmatpush.msk.msrb.mxu2 %vm861_vm3, %v856_v53  ;;  %v1073_v15 = vld [vmem:[#allocation2 + $0x408] ss:$0 sm:$0xff] }
 0x24f   :  { %v586_v61 = vadd.f32 %v585_v57, %v1330_v43  ;;  %v745_v43 = vld [vmem:[#allocation2 + $0x328] sm:$0xff] }
 0x250   :  { %808 = vmatpush.msra.mxu3 %v745_v43  ;;  %831 = vmatpush.msrb.mxu1 %v758_v17  ;;  %v914_v43 = vld [vmem:[#allocation2 + $0x3f8] sm:$0xff] }
 0x251   :  { %v652_v23 = vadd.f32 %v642_v60, %v586_v61  ;;  %879 = vmatpush.msrb.mxu2 %v855_v54 }
 0x252   :  { %832 = vmatpush.msrb.mxu1 %v757_v31 }
 0x253   :  { %v662_v62 = vadd.f32 %v1332_v58, %v652_v23  ;;  %v744_v58 = vld [vmem:[#allocation2 + $0x320] sm:$0xff]  ;;  %880 = vmatpush.msrb.mxu2 %v854_v55 }
 0x254   :  { %809 = vmatpush.msra.mxu3 %v744_v58  ;;  %833 = vmatpush.msrb.mxu1 %v756_v34  ;;  %v1072_v58 = vld [vmem:[#allocation2 + $0x3e0] ss:$0 sm:$0xff] }
 0x255   :  { %v670_v26 = vmax.f32 %v662_v62, 0.0 }
 0x256   :  { %810 = vmatpush.msra.mxu3 %v743_v5  ;;  %834 = vmatpush.msrb.mxu1 %v755_v35 }
 0x257   :  { %v1355_v0 = vmax.f32 %v669_v63, %v670_v26 }
 0x258   :  { %811 = vmatpush.msra.mxu3 %v742_v59  ;;  %835 = vmatpush.msrb.mxu1 %v754_v36 }
 0x259   :  { %685 = vrot.lane.b32.xlu1 %v1355_v0, %s1106_s30 }
 0x25a   :  { %812 = vmatpush.msra.mxu3 %v741_v12  ;;  %836 = vmatpush.msrb.mxu1 %v753_v37 }
 0x25c   :  { %813 = vmatpush.msra.mxu3 %v740_v13  ;;  %837 = vmatpush.msrb.mxu1 %v752_v38  ;;  %v963_v13 = vld [vmem:[#allocation2 + $0x410] sm:$0xff] }
 0x25e   :  { %814 = vmatpush.msra.mxu3 %v739_v16 }
 0x260   :  { %815 = vmatpush.msra.mxu3 %v738_v18 }
 0x262   :  { %816 = vmatpush.msra.mxu3 %v737_v19  ;;  %v1074_v19 = vld [vmem:[#allocation2 + $0x430] ss:$0 sm:$0xff] }
 0x264   :  { %817 = vmatpush.msra.mxu3 %v736_v20 }
 0x266   :  { %818 = vmatpush.msra.mxu3 %v735_v21 }
 0x268   :  { %819 = vmatpush.msra.mxu3 %v734_v27 }
 0x26a   :  { %820 = vmatpush.msra.mxu3 %v733_v30 }
 0x26c   :  { %821 = vmatpush.msra.mxu3 %v732_v32 }
 0x26e   :  { %984 = vmatpush.msrb.mxu3 %v966_v7 }
 0x270   :  { %985 = vmatpush.msrb.mxu3 %v965_v8 }
 0x272   :  { %986 = vmatpush.msrb.mxu3 %v964_v10 }
 0x274   :  { %987 = vmatpush.msrb.mxu3 %v963_v13 }
 0x295   :  { %v1066_v22 = vpop.permute.xlu2 %1065 }
 0x296   :  { %v1068_v24 = vunpack.i.h.bf16 %v1066_v22  ;;  %v1067_v48 = vunpack.i.l.bf16 %v1066_v22 }
 0x298   :  { %v692_v25 = vsel %vm691_vm2, %v1068_v24, 0.0  ;;  %v693_v28 = vsel %vm691_vm2, %v1067_v48, 0.0 }
 0x299   :  { %v696_v29 = vmax.f32 %v1338_v9, %v692_v25  ;;  %v697_v14 = vmax.f32 %v1340_v11, %v693_v28  ;;  %v751_v9 = vld [vmem:[#allocation2 + $0x358] sm:$0xff]  ;;  %v750_v11 = vld [vmem:[#allocation2 + $0x350] sm:$0xff] }
 0x29a   :  { %838 = vmatpush.msrb.mxu1 %v751_v9 }
 0x29b   :  { %782 = vmatmul.f32.vlgmr.msra.gmra.mxu1 %v696_v29  ;;  %802 = vmatmul.f32.vlgmr.msra.gmra.mxu2 %v697_v14 }
 0x29c   :  { %839 = vmatpush.msrb.mxu1 %v750_v11 }
 0x29d   :  { %v851_v26 = vpop.permute.xlu2 %850 }
 0x29e   :  { %840 = vmatpush.msrb.mxu1 %v749_v39 }
 0x2a0   :  { %841 = vmatpush.msrb.mxu1 %v748_v40 }
 0x2bb   :  { %v684_v45 = vpop.permute.xlu0 %683 }
 0x2bc   :  { %v694_v46 = vsel %vm691_vm2, %v684_v45, 0.0 }
 0x2bd   :  { %v698_v49 = vmax.f32 %v1347_v47, %v694_v46 }
 0x2bf   :  { %822 = vmatmul.f32.vlgmr.msra.gmra.mxu3 %v698_v49 }
 0x2cb   :  { %v686_v50 = vpop.permute.xlu1 %685 }
 0x2cc   :  { %v695_v51 = vsel %vm691_vm2, %v686_v50, 0.0 }
 0x2cd   :  { %v699_v52 = vmax.f32 %v1355_v0, %v695_v51 }
 0x2cf   :  { %842 = vmatmul.f32.vlgmr.msrb.gmra.mxu1 %v699_v52 }
 0x318   :  { %v783_v57 = vpop.f32.mrf.mxu1 }
 0x319   :  { %v784_v61 = vadd.f32 %v1071_v56, %v783_v57 }
 0x31e   :  { %v803_v60 = vpop.f32.mrf.mxu2 }
 0x31f   :  { %v804_v47 = vadd.f32 %v803_v60, %v784_v61 }
 0x342   :  { %v823_v42 = vpop.f32.mrf.mxu3 }
 0x343   :  { %v824_v23 = vadd.f32 %v823_v42, %v804_v47 }
 0x34c   :  { %v843_v62 = vpop.f32.mrf.mxu1 }
 0x34d   :  { %v844_v63 = vadd.f32 %v843_v62, %v824_v23 }
 0x34f   :  { %v846_v33 = vmax.f32 %v844_v63, 0.0 }
 0x351   :  { %v853_v0 = vsel %vm54_vm0, %v846_v33, %v851_v26 }
 0x352   :  { %1048 = vmatmul.msk.f32.vlgmr.msrb.gmra.mxu2 %vm857_vm4, %v853_v0 }
 0x3d5   :  { %v882_v2 = vpop.f32.mrf.mxu2 }
 0x3d6   :  { %906 = vmatpush.msra.mxu2 %v882_v2 }
 0x3d7   :  { %1049 = vmatmul.msk.f32.vlgmr.msra.gmra.mxu2 %vm887_vm5, %v847_v1 }
 0x3d8   :  { %932 = vmatpush.msrb.mxu2 %v915_v3 }
 0x3da   :  { %933 = vmatpush.msrb.mxu2 %v914_v43 }
 0x3dc   :  { %934 = vmatpush.msrb.mxu2 %v913_v44 }
 0x3de   :  { %935 = vmatpush.msrb.mxu2 %v912_v4 }
 0x45a   :  { %v908_v5 = vpop.f32.mrf.mxu2 }
 0x45b   :  { %v909_v6 = vadd.f32 %v1072_v58, %v908_v5 }
 0x45d   :  { %v911_v59 = vmax.f32 %v909_v6, 0.0 }
 0x45f   :  { %1050 = vmatmul.msk.f32.vlgmr.msrb.gmra.mxu2 %vm916_vm6, %v911_v59 }
 0x4e2   :  { %v937_v12 = vpop.f32.mrf.mxu2 }
 0x4e3   :  { %957 = vmatpush.msra.mxu2 %v937_v12 }
 0x4e4   :  { %1051 = vmatmul.msk.f32.vlgmr.msra.gmra.mxu2 %vm887_vm5, %v847_v1 }
 0x567   :  { %v959_v16 = vpop.f32.mrf.mxu2 }
 0x568   :  { %v960_v17 = vadd.f32 %v1073_v15, %v959_v16 }
 0x56a   :  { %v962_v18 = vmax.f32 %v960_v17, 0.0 }
 0x56c   :  { %1052 = vmatmul.msk.f32.vlgmr.msrb.gmra.mxu3 %vm916_vm6, %v962_v18 }
 0x5ef   :  { %v989_v20 = vpop.f32.mrf.mxu3 }
 0x5f0   :  { %v990_v21 = vadd.f32 %v1074_v19, %v989_v20 }
 0x5f2   :  { %993 = vst.msk [vmem:[%s1385_s4] sm:$0xff] %vm992_vm7, %v990_v21 }
 0x5f3   :  { %998 = vsyncpa [#allocation3], 1 }

</bundles_post_ra>
